<compile_context>
chip_gen: v7x
topology: tpu7x:2x2x1
jax: 0.10.0
libtpu: 0.0.40
codegen_flags: <defaults>
</compile_context>

<pallas_src>
import jax
import jax.numpy as jnp
from jax.experimental import pallas as pl
from jax.experimental.pallas import tpu as pltpu


# ----------------------------- Pallas kernel ---------------------------------
def _vit_embed_kernel(patches_ref, wt_ref, add_ref, out_ref):
    # patches_ref: (Bt, N+1, Kp) bf16 -- row 0 of each element is all-zero (CLS slot), K zero-padded
    # wt_ref     : (Kp, D)       bf16 -- conv weight reshaped/transposed/padded (resident)
    # add_ref    : (N+1, D)      f32  -- [cls + pos0 ; bias + pos_patches] (resident)
    # out_ref    : (Bt, N+1, D)  f32
    wt = wt_ref[...]
    add = add_ref[...]
    for b in range(patches_ref.shape[0]):  # static unroll over the small per-step batch tile
        emb = jnp.dot(patches_ref[b], wt, preferred_element_type=jnp.float32)  # (N+1, D) MXU, f32 acc
        out_ref[b] = (emb + add).astype(out_ref.dtype)  # single aligned full-block store


def vit_embedding_forward(pixel_values, conv_w, conv_b, cls_token, pos_emb, patch_size):
    """pixel_values: (B, C, H, W) float32 (NCHW, PyTorch convention)."""
    B, C, H, W = pixel_values.shape
    P = patch_size
    D = conv_w.shape[0]
    assert H % P == 0 and W % P == 0, "image size must be divisible by patch_size"
    gh, gw = H // P, W // P
    N = gh * gw
    K = C * P * P
    Kp = ((K + 127) // 128) * 128  # lane-aligned contraction dim
    Np1 = N + 1

    # batch tile: largest divisor of B up to 8 (amortize grid-step overhead, fill MXU M)
    Bt = max(d for d in range(1, min(B, 8) + 1) if B % d == 0)
    assert B % Bt == 0

    # ---- glue: patchify (stride == kernel == P) + zero CLS row + K pad, fused with the bf16 cast.
    x = pixel_values.reshape(B, C, gh, P, gw, P)
    x = jnp.transpose(x, (0, 2, 4, 1, 3, 5)).reshape(B, N, K)       # feature order (c, ph, pw)
    patches = jnp.pad(x, ((0, 0), (1, 0), (0, Kp - K))).astype(jnp.bfloat16)  # (B, N+1, Kp)

    # conv weight (D, C, P, P) -> (Kp, D) bf16; feature order matches `patches`. One-time, tiny.
    wt = conv_w.reshape(D, K).T
    wt = jnp.pad(wt, ((0, Kp - K), (0, 0))).astype(jnp.bfloat16)     # (Kp, D)

    # Batch-invariant add-matrix: row 0 = cls + pos0, rows 1.. = bias + pos_patches.
    pos = pos_emb.reshape(Np1, D).astype(jnp.float32)
    add = jnp.concatenate(
        [cls_token.reshape(1, D).astype(jnp.float32) + pos[0:1, :],
         conv_b.reshape(1, D).astype(jnp.float32) + pos[1:, :]],
        axis=0)                                                       # (N+1, D) f32

    cost = pl.CostEstimate(
        flops=2 * B * Np1 * Kp * D,
        transcendentals=0,
        bytes_accessed=(patches.size * 2 + wt.size * 2 + add.size * 4 + B * Np1 * D * 4),
    )

    out = pl.pallas_call(
        _vit_embed_kernel,
        out_shape=jax.ShapeDtypeStruct((B, Np1, D), jnp.float32),
        grid_spec=pltpu.PrefetchScalarGridSpec(
            num_scalar_prefetch=0,
            grid=(B // Bt,),
            in_specs=[
                pl.BlockSpec((Bt, Np1, Kp), lambda b: (b, 0, 0)),   # patches (per batch tile)
                pl.BlockSpec((Kp, D), lambda b: (0, 0)),            # weight  (resident)
                pl.BlockSpec((Np1, D), lambda b: (0, 0)),           # cls/bias/pos add-matrix (resident)
            ],
            out_specs=pl.BlockSpec((Bt, Np1, D), lambda b: (b, 0, 0)),
        ),
        compiler_params=pltpu.CompilerParams(dimension_semantics=("parallel",)),
        cost_estimate=cost,
    )(patches, wt, add)
    return out


# ----------------------------- reference (pure JAX, f32) ----------------------
def _reference(pixel_values, conv_w, conv_b, cls_token, pos_emb, patch_size):
    B, C, H, W = pixel_values.shape
    P = patch_size
    D = conv_w.shape[0]
    gh, gw = H // P, W // P
    N = gh * gw
    x = pixel_values.reshape(B, C, gh, P, gw, P)
    x = jnp.transpose(x, (0, 2, 4, 1, 3, 5)).reshape(B, N, C * P * P)
    emb = jnp.einsum("bnk,dk->bnd", x, conv_w.reshape(D, -1)) + conv_b
    cls = jnp.broadcast_to(cls_token.reshape(1, 1, D), (B, 1, D))
    emb = jnp.concatenate([cls, emb], axis=1)
    return emb + pos_emb.reshape(1, N + 1, D)


# ----------------------------------- main -------------------------------------
if __name__ == "__main__":
    # small ViT config: image 16x16, patch 4, channels 3, hidden 128 -> 16 patches (+1 CLS)
    # (hidden = 128 keeps the lane dim a full hardware tile -> unmasked vector stores)
    B, C, H, W = 2, 3, 16, 16
    P = 4
    D = 128
    N = (H // P) * (W // P)

    key = jax.random.PRNGKey(0)
    k_x, k_w, k_b, k_cls, k_pos = jax.random.split(key, 5)

    pixel_values = jax.random.normal(k_x, (B, C, H, W), dtype=jnp.float32)
    conv_w = jax.random.normal(k_w, (D, C, P, P), dtype=jnp.float32) * 0.02
    conv_b = jax.random.normal(k_b, (D,), dtype=jnp.float32) * 0.02
    cls_token = jax.random.normal(k_cls, (1, 1, D), dtype=jnp.float32)
    pos_emb = jax.random.normal(k_pos, (1, N + 1, D), dtype=jnp.float32)

    out = vit_embedding_forward(pixel_values, conv_w, conv_b, cls_token, pos_emb, P)
    out = jax.block_until_ready(out)

    ref = _reference(pixel_values, conv_w, conv_b, cls_token, pos_emb, P)
    assert out.shape == (B, N + 1, D), out.shape
    max_err = float(jnp.max(jnp.abs(out - ref)))
    # bf16 matmul operands (f32 accumulation) -> looser tolerance than a pure-f32 Conv2d.
    assert jnp.allclose(out, ref, atol=1e-2, rtol=1e-2), f"mismatch vs reference (max abs err {max_err})"

    print("KERNEL_OK")
</pallas_src>

<mosaic_0001>
module attributes {stable_mosaic.version = 11 : i64} {
  func.func @_vit_embed_kernel(%arg0: i32, %arg1: memref<2x17x128xbf16, #tpu.memory_space<vmem>>, %arg2: memref<128x128xbf16, #tpu.memory_space<vmem>>, %arg3: memref<17x128xf32, #tpu.memory_space<vmem>>, %arg4: memref<2x17x128xf32, #tpu.memory_space<vmem>>) attributes {dimension_semantics = [#tpu.dimension_semantics<parallel>], iteration_bounds = array<i64: 1>, scalar_prefetch = 0 : i64, scratch_operands = 0 : i64, tpu.core_type = #tpu.core_type<tc>, window_params = [{transform_indices = @transform_0, window_bounds = array<i64: 2, 17, 128>}, {pipeline_mode = #tpu.pipeline_mode<synchronous>, transform_indices = @transform_1, window_bounds = array<i64: 128, 128>}, {pipeline_mode = #tpu.pipeline_mode<synchronous>, transform_indices = @transform_2, window_bounds = array<i64: 17, 128>}, {transform_indices = @transform_3, window_bounds = array<i64: 2, 17, 128>}]} {
    %c0 = arith.constant 0 : index
    %c0_0 = arith.constant 0 : index
    %0 = vector.load %arg2[%c0, %c0_0] : memref<128x128xbf16, #tpu.memory_space<vmem>>, vector<128x128xbf16>
    %c0_1 = arith.constant 0 : index
    %c0_2 = arith.constant 0 : index
    %1 = vector.load %arg3[%c0_1, %c0_2] : memref<17x128xf32, #tpu.memory_space<vmem>>, vector<17x128xf32>
    %c0_3 = arith.constant 0 : index
    %c0_4 = arith.constant 0 : index
    %c0_5 = arith.constant 0 : index
    %2 = vector.load %arg1[%c0_3, %c0_4, %c0_5] : memref<2x17x128xbf16, #tpu.memory_space<vmem>>, vector<1x17x128xbf16>
    %3 = vector.shape_cast %2 : vector<1x17x128xbf16> to vector<17x128xbf16>
    %cst = arith.constant dense<0.000000e+00> : vector<17x128xf32>
    %4 = tpu.matmul %3, %0, %cst {dimension_numbers = #tpu.dot_dimension_numbers<[1], [0], [0], [1], [0, 0, 1, 1], [], []>} : vector<17x128xbf16>, vector<128x128xbf16>, vector<17x128xf32> -> vector<17x128xf32>
    %5 = arith.addf %4, %1 : vector<17x128xf32>
    %c0_6 = arith.constant 0 : index
    %c0_7 = arith.constant 0 : index
    %c0_8 = arith.constant 0 : index
    %6 = vector.load %arg4[%c0_6, %c0_7, %c0_8] : memref<2x17x128xf32, #tpu.memory_space<vmem>>, vector<1x17x128xf32>
    %7 = vector.shape_cast %6 : vector<1x17x128xf32> to vector<17x128xf32>
    %8 = vector.shape_cast %5 : vector<17x128xf32> to vector<1x17x128xf32>
    tpu.vector_store %arg4[%c0_6, %c0_7, %c0_8], %8 {strides = array<i32>} : memref<2x17x128xf32, #tpu.memory_space<vmem>>, vector<1x17x128xf32>,
    %c1 = arith.constant 1 : index
    %c0_9 = arith.constant 0 : index
    %c0_10 = arith.constant 0 : index
    %9 = vector.load %arg1[%c1, %c0_9, %c0_10] : memref<2x17x128xbf16, #tpu.memory_space<vmem>>, vector<1x17x128xbf16>
    %10 = vector.shape_cast %9 : vector<1x17x128xbf16> to vector<17x128xbf16>
    %cst_11 = arith.constant dense<0.000000e+00> : vector<17x128xf32>
    %11 = tpu.matmul %10, %0, %cst_11 {dimension_numbers = #tpu.dot_dimension_numbers<[1], [0], [0], [1], [0, 0, 1, 1], [], []>} : vector<17x128xbf16>, vector<128x128xbf16>, vector<17x128xf32> -> vector<17x128xf32>
    %12 = arith.addf %11, %1 : vector<17x128xf32>
    %c1_12 = arith.constant 1 : index
    %c0_13 = arith.constant 0 : index
    %c0_14 = arith.constant 0 : index
    %13 = vector.load %arg4[%c1_12, %c0_13, %c0_14] : memref<2x17x128xf32, #tpu.memory_space<vmem>>, vector<1x17x128xf32>
    %14 = vector.shape_cast %13 : vector<1x17x128xf32> to vector<17x128xf32>
    %15 = vector.shape_cast %12 : vector<17x128xf32> to vector<1x17x128xf32>
    tpu.vector_store %arg4[%c1_12, %c0_13, %c0_14], %15 {strides = array<i32>} : memref<2x17x128xf32, #tpu.memory_space<vmem>>, vector<1x17x128xf32>,
    return
  }
  func.func @transform_0(%arg0: i32) -> (i32, i32, i32) {
    %c0_i32 = arith.constant 0 : i32
    %c0_i32_0 = arith.constant 0 : i32
    %c0_i32_1 = arith.constant 0 : i32
    return %arg0, %c0_i32, %c0_i32_0 : i32, i32, i32
  }
  func.func @transform_1(%arg0: i32) -> (i32, i32) {
    %c0_i32 = arith.constant 0 : i32
    %c0_i32_0 = arith.constant 0 : i32
    %c0_i32_1 = arith.constant 0 : i32
    return %c0_i32, %c0_i32_0 : i32, i32
  }
  func.func @transform_2(%arg0: i32) -> (i32, i32) {
    %c0_i32 = arith.constant 0 : i32
    %c0_i32_0 = arith.constant 0 : i32
    %c0_i32_1 = arith.constant 0 : i32
    return %c0_i32, %c0_i32_0 : i32, i32
  }
  func.func @transform_3(%arg0: i32) -> (i32, i32, i32) {
    %c0_i32 = arith.constant 0 : i32
    %c0_i32_0 = arith.constant 0 : i32
    %c0_i32_1 = arith.constant 0 : i32
    return %arg0, %c0_i32, %c0_i32_0 : i32, i32, i32
  }
}

</mosaic_0001>

<bundles_post_ra>
// kernel: tpu_custom_call.1
= control target key start
LH: loop header
LB: loop body
LE: loop exit
PB: predicated region body
PF: predicated region fallthrough
CT: control target
= control target key end

     0   :  { %8 = vsyncpa [#allocation3], 0  ;;  %s348_s12 = smov [#allocation2]   ;;  %s422_s0 = inlined_call_operand.vmem [shape: bf16[2,17,128], index: 0, kind: input, shape index: {}]   ;;  %s423_s1 = inlined_call_operand.hbm [shape: bf16[128,128], index: 1, kind: input, shape index: {}]   ;;  %s424_s2 = inlined_call_operand.vmem [shape: f32[17,128], index: 2, kind: input, shape index: {}]   ;;  %s425_s3 = inlined_call_operand.vmem [shape: f32[2,17,128], index: 3, kind: output, shape index: {}]  }
   0x1   :  { %s16_s13 = sshll.u32 %s348_s12, 4  ;;  %s324_s16 = scalar_lea.hbm %s423_s1, 1024  ;;  %s17_s13 = int_to_ptr.vmem [resolvable:$true] %s16_s13 }
   0x2   :  { %p325_p0 = scmp.ne.s32.totalorder %s423_s1, %s324_s16  ;;  %p328_p1 = scmp.lt.u32.totalorder %s324_s16, %s423_s1 }
   0x4   :  { %p330_p2 = pnand %p328_p1, %p325_p0 }
   0x6   :  { %333 = shalt.err (!%p330_p2)
}
   0x7   :  { %s334_s21 = scalar_lea.vmem %s17_s13, 1024  ;;  %p339_p4 = scmp.lt.s32.totalorder %s17_s13, %s17_s13 }
   0x8   :  { %p335_p3 = scmp.ne.s32.totalorder %s17_s13, %s334_s21  ;;  %p340_p5 = scmp.lt.s32.totalorder %s334_s21, %s334_s21 }
   0xa   :  { %p341_p6 = por %p340_p5, %p339_p4 }
   0xc   :  { %p342_p7 = pnand %p341_p6, %p335_p3 }
   0xe   :  { %345 = shalt.err (!%p342_p7)
}
   0xf   :  { %s349_s22 = smov 64   ;;  %s350_s23 = smov 4  }
  0x10   :  { %22 = dma.hbm_to_vmem [thread:$0]  %s423_s1, 1024, %s17_s13, [#allocation3], %s349_s22, %s349_s22, %s350_s23  }
  0x11   :  { %346 = dma.done.wait [#allocation3], 1024  }
  0x12   :  { %347 = vsyncadd [#allocation3], 4294966272  ;;  %v312_v0 = vld [vmem:[#allocation2] sm:$0xff]   ;;  %v313_v1 = vld [vmem:[#allocation2 + $0x8] sm:$0xff]  }
  0x13   :  { %269 = vmatprep.subr.bf16.mxu0 %v312_v0  ;;  %289 = vmatprep.subr.bf16.mxu1 %v312_v0  ;;  %v314_v2 = vld [vmem:[#allocation2 + $0x10] sm:$0xff]   ;;  %v315_v3 = vld [vmem:[#allocation2 + $0x18] sm:$0xff]   ;;  %v320_v4 = vld [vmem:[%s422_s0] sm:$0xff]  }
  0x14   :  { %270 = vmatpush3.bf16.msra.mxu0 %v312_v0  ;;  %290 = vmatpush3.bf16.msra.mxu1 %v312_v0  ;;  %v321_v5 = vld [vmem:[%s422_s0 + $0xc] sm:$0xff]   ;;  %v316_v6 = vld [vmem:[#allocation2 + $0x20] sm:$0xff]   ;;  %v317_v7 = vld [vmem:[#allocation2 + $0x28] sm:$0xff]  }
  0x15   :  { %271 = vmatprep.subr.bf16.mxu0 %v313_v1  ;;  %291 = vmatprep.subr.bf16.mxu1 %v313_v1  ;;  %v318_v8 = vld [vmem:[#allocation2 + $0x30] sm:$0xff]   ;;  %v319_v9 = vld [vmem:[#allocation2 + $0x38] sm:$0xff]   ;;  %v45_v13 = vld [vmem:[%s424_s2] sm:$0xff] }
  0x16   :  { %285 = vmatprep.mubr.bf16.mxu0 %v320_v4  ;;  %305 = vmatprep.mubr.bf16.mxu1 %v321_v5  ;;  %v322_v10 = vld [vmem:[%s422_s0 + $0x8] ss:$0 sps:$4 sm:$0x11]   ;;  %v323_v11 = vld [vmem:[%s422_s0 + $0x14] ss:$0 sps:$4 sm:$0x11]  }
  0x17   :  { %v47_v12 = vld [vmem:[%s424_s2 + $0x10] sm:$0x1]  ;;  %v46_v20 = vld [vmem:[%s424_s2 + $0x8] sm:$0xff] }
  0x18   :  { %272 = vmatpush3.bf16.msra.mxu0 %v313_v1  ;;  %292 = vmatpush3.bf16.msra.mxu1 %v313_v1 }
  0x19   :  { %273 = vmatprep.subr.bf16.mxu0 %v314_v2  ;;  %293 = vmatprep.subr.bf16.mxu1 %v314_v2 }
  0x1c   :  { %274 = vmatpush3.bf16.msra.mxu0 %v314_v2  ;;  %294 = vmatpush3.bf16.msra.mxu1 %v314_v2 }
  0x1d   :  { %275 = vmatprep.subr.bf16.mxu0 %v315_v3  ;;  %295 = vmatprep.subr.bf16.mxu1 %v315_v3 }
  0x20   :  { %276 = vmatpush3.bf16.msra.mxu0 %v315_v3  ;;  %296 = vmatpush3.bf16.msra.mxu1 %v315_v3 }
  0x21   :  { %277 = vmatprep.subr.bf16.mxu0 %v316_v6  ;;  %297 = vmatprep.subr.bf16.mxu1 %v316_v6 }
  0x24   :  { %278 = vmatpush3.bf16.msra.mxu0 %v316_v6  ;;  %298 = vmatpush3.bf16.msra.mxu1 %v316_v6 }
  0x25   :  { %279 = vmatprep.subr.bf16.mxu0 %v317_v7  ;;  %299 = vmatprep.subr.bf16.mxu1 %v317_v7 }
  0x28   :  { %280 = vmatpush3.bf16.msra.mxu0 %v317_v7  ;;  %300 = vmatpush3.bf16.msra.mxu1 %v317_v7 }
  0x29   :  { %281 = vmatprep.subr.bf16.mxu0 %v318_v8  ;;  %301 = vmatprep.subr.bf16.mxu1 %v318_v8 }
  0x2c   :  { %282 = vmatpush3.bf16.msra.mxu0 %v318_v8  ;;  %302 = vmatpush3.bf16.msra.mxu1 %v318_v8 }
  0x2d   :  { %283 = vmatprep.subr.bf16.mxu0 %v319_v9  ;;  %303 = vmatprep.subr.bf16.mxu1 %v319_v9 }
  0x30   :  { %284 = vmatpush3.bf16.msra.mxu0 %v319_v9  ;;  %304 = vmatpush3.bf16.msra.mxu1 %v319_v9 }
  0x33   :  { %286 = vmatmul.mubr.bf16.vlgmr.msra.gmra.mrb[0].mxu0 %v322_v10  ;;  %306 = vmatmul.mubr.bf16.vlgmr.msra.gmra.mrb[0].mxu1 %v323_v11 }
 0x106   :  { %v287_v14 = vpop.f32.mrb[0].mxu0  ;;  %v307_v15 = vpop.f32.mrb[0].mxu1 }
 0x107   :  { %v152_v16 = vadd.f32 %v287_v14, %v47_v12  ;;  %v217_v17 = vadd.f32 %v307_v15, %v47_v12  ;;  %v143_v18 = vpop.f32.mrb[1].mxu0  ;;  %v208_v19 = vpop.f32.mrb[1].mxu1 }
 0x108   :  { %v144_v21 = vadd.f32 %v143_v18, %v45_v13  ;;  %v209_v22 = vadd.f32 %v208_v19, %v45_v13  ;;  %v288_v23 = vpop.f32.mrb[2].mxu0  ;;  %v308_v24 = vpop.f32.mrb[2].mxu1 }
 0x109   :  { %159 = vst [vmem:[%s425_s3 + $0x10] sm:$0x1] %v152_v16  ;;  %248 = vst [vmem:[%s425_s3 + $0x28] sm:$0x1] %v217_v17  ;;  %v146_v25 = vpop.f32.mrb[3].mxu0  ;;  %v211_v26 = vpop.f32.mrb[3].mxu1 }
 0x10a   :  { %157 = vst [vmem:[%s425_s3] sm:$0xff] %v144_v21  ;;  %246 = vst [vmem:[%s425_s3 + $0x18] sm:$0xff] %v209_v22  ;;  %v147_v27 = vadd.f32 %v146_v25, %v46_v20  ;;  %v212_v28 = vadd.f32 %v211_v26, %v46_v20 }
 0x10c   :  { %158 = vst [vmem:[%s425_s3 + $0x8] sm:$0xff] %v147_v27  ;;  %247 = vst [vmem:[%s425_s3 + $0x20] sm:$0xff] %v212_v28 }
 0x10d   :  { %230 = vsyncpa [#allocation3], 1 }

</bundles_post_ra>
